<compile_context>
chip_gen: v7x
topology: tpu7x:2x2x1
jax: 0.10.0
libtpu: 0.0.40
codegen_flags: <defaults>
</compile_context>

<pallas_src>
import jax
import jax.numpy as jnp
from jax.experimental import pallas as pl
from jax.experimental.pallas import tpu as pltpu


def _tpu_vmem_and_cores():
    """Best-effort (physical VMEM bytes per TensorCore, TensorCores per chip)."""
    vmem_cap = 64 << 20  # conservative default (fits every generation)
    try:
        vmem_cap = int(pltpu.get_tpu_info().vmem_capacity_bytes)
    except Exception:
        pass
    cores = 1
    try:
        cores = int(getattr(jax.devices()[0], "num_cores", 1) or 1)
    except Exception:
        pass
    if cores <= 1 and vmem_cap <= (64 << 20):
        cores = 2  # v7x: 64 MiB VMEM per TensorCore, 2 TensorCores per chip.
    return vmem_cap, cores


# --------------------------- fused single-pass kernel ---------------------------

def _make_fused_kernel(hw: int):
    inv_hw = 1.0 / float(hw)

    def kernel(x_ref, w1a_ref, w1b_ref, w2_ref, o_ref):
        x = x_ref[...]                                          # (TB, C, HW), native dtype
        # Pooled stats only are promoted to f32 -- no full-tile f32 temporaries.
        avg = jnp.sum(x, axis=2, dtype=jnp.float32) * inv_hw    # (TB, C)
        mx = jnp.max(x, axis=2).astype(jnp.float32)             # (TB, C) (max exact in bf16)
        # fc1 on split weight halves (== fc1 on cat([avg, max])) + ReLU, fc2 + sigmoid.
        h = jnp.dot(avg, w1a_ref[...], preferred_element_type=jnp.float32)
        h = h + jnp.dot(mx, w1b_ref[...], preferred_element_type=jnp.float32)
        h = jnp.maximum(h, 0.0)                                  # (TB, hidden)
        s = jax.nn.sigmoid(jnp.dot(h, w2_ref[...], preferred_element_type=jnp.float32))
        # Gate cast to x.dtype before the multiply (documented minor-numerics choice).
        o_ref[...] = (x * s[:, :, None].astype(x.dtype)).astype(o_ref.dtype)

    return kernel


# --------------------- spatially-tiled fallback kernels --------------------------

def _make_pool_gate_kernel(hw: int, t_hw: int, ragged: bool):
    inv_hw = 1.0 / float(hw)

    def kernel(x_ref, w1a_ref, w1b_ref, w2_ref, s_ref, sum_acc, max_acc):
        hi = pl.program_id(1)

        @pl.when(hi == 0)
        def _():
            sum_acc[...] = jnp.zeros_like(sum_acc)
            max_acc[...] = jnp.full_like(max_acc, -jnp.inf)

        x = x_ref[...]                                          # (1, C, t_hw)
        if ragged:
            lane = jax.lax.broadcasted_iota(jnp.int32, x.shape, 2)
            valid = (lane + hi * t_hw) < hw
            part_sum = jnp.sum(jnp.where(valid, x, jnp.zeros_like(x)),
                               axis=2, dtype=jnp.float32)
            part_max = jnp.max(jnp.where(valid, x, jnp.full_like(x, -jnp.inf)), axis=2)
        else:
            part_sum = jnp.sum(x, axis=2, dtype=jnp.float32)
            part_max = jnp.max(x, axis=2)
        sum_acc[...] = sum_acc[...] + part_sum
        max_acc[...] = jnp.maximum(max_acc[...], part_max.astype(jnp.float32))

        @pl.when(hi == pl.num_programs(1) - 1)
        def _():
            avg = sum_acc[...] * inv_hw                          # (1, C)
            h = jnp.dot(avg, w1a_ref[...], preferred_element_type=jnp.float32)
            h = h + jnp.dot(max_acc[...], w1b_ref[...], preferred_element_type=jnp.float32)
            h = jnp.maximum(h, 0.0)
            s = jax.nn.sigmoid(jnp.dot(h, w2_ref[...], preferred_element_type=jnp.float32))
            s_ref[...] = s[:, None, :].astype(s_ref.dtype)       # (1, 1, C)

    return kernel


def _scale_kernel(x_ref, s_ref, o_ref):
    x = x_ref[...]                                              # (1, C, t_hw)
    gate = s_ref[...][:, 0, :, None].astype(x.dtype)            # (1, C, 1)
    o_ref[...] = (x * gate).astype(o_ref.dtype)


# ----------------------------------- wrapper ------------------------------------

def se_layer(x, w1, w2, *, donate_input=False, force_spatial_tiling=False,
             spatial_tile=None):
    """SELayer forward. x: (B, C, H, W); w1: (hidden, 2C); w2: (C, hidden)."""
    B, C, H, W = x.shape
    hw = H * W
    hidden = w1.shape[0]

    # Split fc1 weight into avg / max halves and pre-transpose once in XLA.
    w1a_t = jnp.transpose(w1[:, :C])                            # (C, hidden)
    w1b_t = jnp.transpose(w1[:, C:])                            # (C, hidden)
    w2_t = jnp.transpose(w2)                                    # (hidden, C)

    x_flat = x.reshape(B, C, hw)

    itemsize = jnp.dtype(x.dtype).itemsize
    weight_bytes = (w1a_t.size + w1b_t.size + w2_t.size) * jnp.dtype(w1.dtype).itemsize

    vmem_cap, cores = _tpu_vmem_and_cores()
    # ~55% of physical VMEM for the streamed blocks; weights stay double-buffered.
    stream_budget = max(int(0.55 * vmem_cap) - 2 * weight_bytes - (2 << 20), 8 << 20)

    per_sample = C * hw * itemsize            # one (C, HW) slab of x / out
    temp_per_sample = C * hw * 4              # conservative f32-sized in-kernel temp
    per_tb = 4 * per_sample + temp_per_sample  # 2x in-buf + 2x out-buf + temps

    use_fused = (per_tb <= stream_budget or hw < 256) and not force_spatial_tiling

    if use_fused:
        # ------------------------- fused single-pass path -------------------------
        # TODO(synk): if hw < 256 and a single sample still exceeded VMEM, a
        # channel-tiled fallback would be needed; unrealistic for SE layers.
        tb_max = max(1, stream_budget // per_tb)
        divisors = [d for d in range(1, B + 1) if B % d == 0 and d <= tb_max]
        if cores >= 2 and B >= 2:
            even = [d for d in divisors if (B // d) >= 2 and (B // d) % 2 == 0]
            tb = max(even) if even else max(divisors)
        else:
            tb = max(divisors)
        grid = (B // tb,)

        vmem_limit = int(min(max(tb * per_tb + 2 * weight_bytes + (2 << 20), 32 << 20),
                             int(0.9 * vmem_cap)))

        out_flat = pl.pallas_call(
            _make_fused_kernel(hw),
            out_shape=jax.ShapeDtypeStruct((B, C, hw), x.dtype),
            grid_spec=pltpu.PrefetchScalarGridSpec(
                num_scalar_prefetch=0,
                grid=grid,
                in_specs=[
                    pl.BlockSpec((tb, C, hw), lambda b: (b, 0, 0)),   # x (TB samples)
                    pl.BlockSpec(w1a_t.shape, lambda b: (0, 0)),      # fc1 (avg half)
                    pl.BlockSpec(w1b_t.shape, lambda b: (0, 0)),      # fc1 (max half)
                    pl.BlockSpec(w2_t.shape, lambda b: (0, 0)),       # fc2
                ],
                out_specs=pl.BlockSpec((tb, C, hw), lambda b: (b, 0, 0)),
            ),
            compiler_params=pltpu.CompilerParams(
                dimension_semantics=("parallel",),
                vmem_limit_bytes=vmem_limit,
            ),
            input_output_aliases=({0: 0} if donate_input else {}),
        )(x_flat, w1a_t, w1b_t, w2_t)
        return out_flat.reshape(B, C, H, W)

    # --------------- spatially-tiled fallback (large samples, e.g. v7x) -----------
    if spatial_tile is not None:
        t_hw = int(spatial_tile)
        if t_hw >= hw:
            t_hw = hw
    else:
        per_hw_unit = 4 * C * itemsize + C * 4      # streamed bytes per spatial column
        t_hw_max = max(128, stream_budget // per_hw_unit)
        t_hw = max(128, (t_hw_max // 128) * 128)
        if t_hw >= hw:
            t_hw = hw
        elif hw % 128 != 0:
            t_hw = min(t_hw, max(128, (hw // 128) * 128))
    n_hw = -(-hw // t_hw)
    ragged = (hw % t_hw) != 0

    blk_bytes = C * t_hw * itemsize
    pool_vmem = int(min(max(2 * blk_bytes + C * t_hw * 4 + 2 * weight_bytes
                            + 4 * C * 4 + (2 << 20), 32 << 20),
                        int(0.9 * vmem_cap)))

    gate = pl.pallas_call(
        _make_pool_gate_kernel(hw, t_hw, ragged),
        out_shape=jax.ShapeDtypeStruct((B, 1, C), jnp.float32),
        grid_spec=pltpu.PrefetchScalarGridSpec(
            num_scalar_prefetch=0,
            grid=(B, n_hw),
            in_specs=[
                pl.BlockSpec((1, C, t_hw), lambda b, h: (b, 0, h)),
                pl.BlockSpec(w1a_t.shape, lambda b, h: (0, 0)),
                pl.BlockSpec(w1b_t.shape, lambda b, h: (0, 0)),
                pl.BlockSpec(w2_t.shape, lambda b, h: (0, 0)),
            ],
            out_specs=pl.BlockSpec((1, 1, C), lambda b, h: (b, 0, 0)),
            scratch_shapes=[pltpu.VMEM((1, C), jnp.float32),
                            pltpu.VMEM((1, C), jnp.float32)],
        ),
        compiler_params=pltpu.CompilerParams(
            dimension_semantics=("parallel", "arbitrary"),
            vmem_limit_bytes=pool_vmem,
        ),
    )(x_flat, w1a_t, w1b_t, w2_t)

    scale_vmem = int(min(max(4 * blk_bytes + C * t_hw * 4 + (2 << 20), 32 << 20),
                         int(0.9 * vmem_cap)))
    out_flat = pl.pallas_call(
        _scale_kernel,
        out_shape=jax.ShapeDtypeStruct((B, C, hw), x.dtype),
        grid_spec=pltpu.PrefetchScalarGridSpec(
            num_scalar_prefetch=0,
            grid=(B, n_hw),
            in_specs=[
                pl.BlockSpec((1, C, t_hw), lambda b, h: (b, 0, h)),
                pl.BlockSpec((1, 1, C), lambda b, h: (b, 0, 0)),
            ],
            out_specs=pl.BlockSpec((1, C, t_hw), lambda b, h: (b, 0, h)),
        ),
        compiler_params=pltpu.CompilerParams(
            dimension_semantics=("parallel", "parallel"),
            vmem_limit_bytes=scale_vmem,
        ),
    )(x_flat, gate)
    return out_flat.reshape(B, C, H, W)


def se_layer_ref(x, w1, w2):
    """Pure-JAX reference mirroring the PyTorch forward."""
    y_avg = jnp.mean(x, axis=(2, 3))                            # (B, C)
    y_max = jnp.max(x, axis=(2, 3))                             # (B, C)
    y = jnp.concatenate([y_avg, y_max], axis=1)                 # (B, 2C)
    h = jnp.maximum(y @ w1.T, 0.0)                              # (B, hidden)
    s = jax.nn.sigmoid(h @ w2.T)                                # (B, C)
    return x * s[:, :, None, None]


if __name__ == "__main__":
    key = jax.random.PRNGKey(0)
    B, C, H, W = 2, 16, 16, 16
    reduction = 8
    hidden = C // reduction

    kx, k1, k2 = jax.random.split(key, 3)
    x = jax.random.normal(kx, (B, C, H, W), dtype=jnp.float32)
    # nn.Linear(out_features, in_features) weight convention, bias=False.
    w1 = jax.random.normal(k1, (hidden, 2 * C), dtype=jnp.float32) / jnp.sqrt(2.0 * C)
    w2 = jax.random.normal(k2, (C, hidden), dtype=jnp.float32) / jnp.sqrt(float(hidden))

    ref = se_layer_ref(x, w1, w2)
    out = jax.block_until_ready(se_layer(x, w1, w2))
    assert out.shape == x.shape
    assert jnp.allclose(out, ref, atol=1e-5, rtol=1e-5), "fused path mismatch vs reference"

    # Exercise the spatially-tiled fallback path (ragged HW) at a small size.
    x2 = jax.random.normal(kx, (B, C, 12, 12), dtype=jnp.float32)
    ref2 = se_layer_ref(x2, w1, w2)
    out2 = jax.block_until_ready(
        se_layer(x2, w1, w2, force_spatial_tiling=True, spatial_tile=128))
    assert jnp.allclose(out2, ref2, atol=1e-5, rtol=1e-5), "fallback path mismatch vs reference"

    print("KERNEL_OK")
</pallas_src>

<mosaic_0001>
module attributes {stable_mosaic.version = 11 : i64} {
  func.func @kernel(%arg0: i32, %arg1: memref<1x16x256xf32, #tpu.memory_space<vmem>>, %arg2: memref<16x2xf32, #tpu.memory_space<vmem>>, %arg3: memref<16x2xf32, #tpu.memory_space<vmem>>, %arg4: memref<2x16xf32, #tpu.memory_space<vmem>>, %arg5: memref<1x16x256xf32, #tpu.memory_space<vmem>>) attributes {dimension_semantics = [#tpu.dimension_semantics<parallel>], iteration_bounds = array<i64: 2>, scalar_prefetch = 0 : i64, scratch_operands = 0 : i64, tpu.core_type = #tpu.core_type<tc>, window_params = [{transform_indices = @transform_0, window_bounds = array<i64: 1, 16, 256>}, {pipeline_mode = #tpu.pipeline_mode<synchronous>, transform_indices = @transform_1, window_bounds = array<i64: 16, 2>}, {pipeline_mode = #tpu.pipeline_mode<synchronous>, transform_indices = @transform_2, window_bounds = array<i64: 16, 2>}, {pipeline_mode = #tpu.pipeline_mode<synchronous>, transform_indices = @transform_3, window_bounds = array<i64: 2, 16>}, {transform_indices = @transform_4, window_bounds = array<i64: 1, 16, 256>}]} {
    %c0 = arith.constant 0 : index
    %c0_0 = arith.constant 0 : index
    %c0_1 = arith.constant 0 : index
    %0 = vector.load %arg1[%c0, %c0_0, %c0_1] : memref<1x16x256xf32, #tpu.memory_space<vmem>>, vector<1x16x256xf32>
    %cst = arith.constant dense<0.000000e+00> : vector<1x16xf32>
    %1 = vector.multi_reduction <add>, %0, %cst [2] : vector<1x16x256xf32> to vector<1x16xf32>
    %cst_2 = arith.constant 3.906250e-03 : f32
    %2 = vector.broadcast %cst_2 : f32 to vector<1x16xf32>
    %3 = arith.mulf %1, %2 : vector<1x16xf32>
    %cst_3 = arith.constant dense<0xFF800000> : vector<1x16xf32>
    %4 = vector.multi_reduction <maximumf>, %0, %cst_3 [2] : vector<1x16x256xf32> to vector<1x16xf32>
    %c0_4 = arith.constant 0 : index
    %c0_5 = arith.constant 0 : index
    %5 = vector.load %arg2[%c0_4, %c0_5] : memref<16x2xf32, #tpu.memory_space<vmem>>, vector<16x2xf32>
    %cst_6 = arith.constant dense<0.000000e+00> : vector<1x2xf32>
    %6 = tpu.matmul %3, %5, %cst_6 {dimension_numbers = #tpu.dot_dimension_numbers<[1], [0], [0], [1], [0, 0, 1, 1], [], []>} : vector<1x16xf32>, vector<16x2xf32>, vector<1x2xf32> -> vector<1x2xf32>
    %c0_7 = arith.constant 0 : index
    %c0_8 = arith.constant 0 : index
    %7 = vector.load %arg3[%c0_7, %c0_8] : memref<16x2xf32, #tpu.memory_space<vmem>>, vector<16x2xf32>
    %cst_9 = arith.constant dense<0.000000e+00> : vector<1x2xf32>
    %8 = tpu.matmul %4, %7, %cst_9 {dimension_numbers = #tpu.dot_dimension_numbers<[1], [0], [0], [1], [0, 0, 1, 1], [], []>} : vector<1x16xf32>, vector<16x2xf32>, vector<1x2xf32> -> vector<1x2xf32>
    %9 = arith.addf %6, %8 : vector<1x2xf32>
    %cst_10 = arith.constant 0.000000e+00 : f32
    %10 = vector.broadcast %cst_10 : f32 to vector<1x2xf32>
    %11 = arith.maximumf %9, %10 : vector<1x2xf32>
    %c0_11 = arith.constant 0 : index
    %c0_12 = arith.constant 0 : index
    %12 = vector.load %arg4[%c0_11, %c0_12] : memref<2x16xf32, #tpu.memory_space<vmem>>, vector<2x16xf32>
    %cst_13 = arith.constant dense<0.000000e+00> : vector<1x16xf32>
    %13 = tpu.matmul %11, %12, %cst_13 {dimension_numbers = #tpu.dot_dimension_numbers<[1], [0], [0], [1], [0, 0, 1, 1], [], []>} : vector<1x2xf32>, vector<2x16xf32>, vector<1x16xf32> -> vector<1x16xf32>
    %14 = arith.negf %13 : vector<1x16xf32>
    %15 = math.exp %14 : vector<1x16xf32>
    %cst_14 = arith.constant 1.000000e+00 : f32
    %16 = vector.broadcast %cst_14 : f32 to vector<1x16xf32>
    %17 = arith.addf %16, %15 : vector<1x16xf32>
    %18 = arith.divf %16, %17 : vector<1x16xf32>
    %19 = vector.shape_cast %18 : vector<1x16xf32> to vector<1x16x1xf32>
    %20 = vector.broadcast %19 : vector<1x16x1xf32> to vector<1x16x256xf32>
    %21 = arith.mulf %0, %20 : vector<1x16x256xf32>
    %c0_15 = arith.constant 0 : index
    %c0_16 = arith.constant 0 : index
    %c0_17 = arith.constant 0 : index
    %22 = vector.load %arg5[%c0_15, %c0_16, %c0_17] : memref<1x16x256xf32, #tpu.memory_space<vmem>>, vector<1x16x256xf32>
    tpu.vector_store %arg5[%c0_15, %c0_16, %c0_17], %21 {strides = array<i32>} : memref<1x16x256xf32, #tpu.memory_space<vmem>>, vector<1x16x256xf32>,
    return
  }
  func.func @transform_0(%arg0: i32) -> (i32, i32, i32) {
    %c0_i32 = arith.constant 0 : i32
    %c0_i32_0 = arith.constant 0 : i32
    %c0_i32_1 = arith.constant 0 : i32
    return %arg0, %c0_i32, %c0_i32_0 : i32, i32, i32
  }
  func.func @transform_1(%arg0: i32) -> (i32, i32) {
    %c0_i32 = arith.constant 0 : i32
    %c0_i32_0 = arith.constant 0 : i32
    %c0_i32_1 = arith.constant 0 : i32
    return %c0_i32, %c0_i32_0 : i32, i32
  }
  func.func @transform_2(%arg0: i32) -> (i32, i32) {
    %c0_i32 = arith.constant 0 : i32
    %c0_i32_0 = arith.constant 0 : i32
    %c0_i32_1 = arith.constant 0 : i32
    return %c0_i32, %c0_i32_0 : i32, i32
  }
  func.func @transform_3(%arg0: i32) -> (i32, i32) {
    %c0_i32 = arith.constant 0 : i32
    %c0_i32_0 = arith.constant 0 : i32
    %c0_i32_1 = arith.constant 0 : i32
    return %c0_i32, %c0_i32_0 : i32, i32
  }
  func.func @transform_4(%arg0: i32) -> (i32, i32, i32) {
    %c0_i32 = arith.constant 0 : i32
    %c0_i32_0 = arith.constant 0 : i32
    %c0_i32_1 = arith.constant 0 : i32
    return %arg0, %c0_i32, %c0_i32_0 : i32, i32, i32
  }
}

</mosaic_0001>

<bundles_post_ra>
// kernel: tpu_custom_call.1
= control target key start
LH: loop header
LB: loop body
LE: loop exit
PB: predicated region body
PF: predicated region fallthrough
CT: control target
= control target key end

     0   :  { %9 = vsyncpa [#allocation3], 0  ;;  %s1050_s0 = inlined_call_operand.hbm [shape: f32[2,16,256], index: 0, kind: input, shape index: {}]   ;;  %s1051_s1 = inlined_call_operand.vmem [shape: f32[16,2], index: 1, kind: input, shape index: {}]   ;;  %s1052_s2 = inlined_call_operand.vmem [shape: f32[16,2], index: 2, kind: input, shape index: {}]   ;;  %s1053_s3 = inlined_call_operand.vmem [shape: f32[2,16], index: 3, kind: input, shape index: {}]   ;;  %s1054_s4 = inlined_call_operand.hbm [shape: f32[2,16,256], index: 4, kind: output, shape index: {}]  }
   0x1   :  { %11 = vsyncpa [#allocation3 + $0x1], 0 }
   0x2   :  { %12 = vsyncpa [#allocation4], 0 }
   0x3   :  { %14 = vsyncpa [#allocation4 + $0x1], 0  ;;  %s846_s15 = smov 0   ;;  %s848_s16 = smov 0  }
   0x4   :  { %s850_s17 = smov 0   ;;  %s852_s18 = smov 0  }
   0x5 LB: > { %s867_s19 = sadd.s32 4294967295, %s810_s18   ;;  %s601_s20 = sadd.s32 4294967294, %s810_s18   ;;  %s810_s18 = sphi %s852_s18, %s1067_s18   ;;  %s806_s17 = sphi %s850_s17, %s1066_s17   ;;  %s802_s16 = sphi %s848_s16, %s1065_s16   ;;  %s798_s15 = sphi %s846_s15, %s1064_s15  }
   0x6   : > { %s871_s21 = sadd.s32 1, %s810_s18   ;;  %s27_s22 = sadd.s32 1, %s806_s17 }
   0x7   : > { %s24_s23 = ssub.s32 %s810_s18, %s871_s21  ;;  %p34_p0 = scmp.ne.s32.totalorder %s806_s17, %s802_s16 }
   0x8   : > { %p25_p1 = scmp.eq.s32.totalorder %s24_s23, 0  ;;  %p35_p2 = scmp.eq.s32.totalorder %s810_s18, 0 }
   0x9   : > { %p40_p3 = scmp.ne.s32.totalorder %s802_s16, %s798_s15  ;;  %p41_p4 = scmp.eq.s32.totalorder %s867_s19, 0 }
   0xa   : > { %s883_s24 = scalar_select %p25_p1, %s806_s17, %s27_s22  }
   0xb   : > { %p885_p5 = por %p35_p2, %p34_p0  ;;  %p889_p6 = por %p41_p4, %p40_p3 }
   0xc   : > { %p127_p7 = scmp.eq.s32.totalorder %s867_s19, 1  ;;  %p133_p8 = scmp.eq.s32.totalorder %s601_s20, 1 }
   0xd   : > { %p669_p10 = scmp.lt.s32.totalorder %s810_s18, 2  ;;  %s162_s29 = sand.u32 1, %s806_s17  }
   0xe   : > { %p896_p11 = por %p127_p7, %p34_p0  ;;  %p900_p12 = por %p133_p8, %p40_p3 }
   0xf   : > { %s620_s30 = sshll.u32 %s810_s18, 9  ;;  %s604_s5 = sshll.u32 %s162_s29, 5 }
  0x10   : > { %s1058_s27 = scalar_select %p896_p11, 1, 0 }
  0x11   : > { %s1059_s28 = scalar_select %p900_p12, 1, 0 }
  0x12   : > { %s909_s8 = scalar_lea.hbm %s1050_s0, %s620_s30  ;;  %s166_s9 = scalar_lea.vmem [#allocation2], %s604_s5 }
  0x13   : > { %s173_s10 = sshll.u32 %s166_s9, 4  ;;  %p913_p13 = pnand %p669_p10, %p885_p5  ;;  %s917_s10 = int_to_ptr.vmem [resolvable:$true] %s173_s10 }
  0x14   : > { %s919_s12 = scalar_lea.sflag [#allocation3], %s162_s29  ;;  %s714_s13 = scalar_lea.hbm %s909_s8, 512 }
  0x15   : > { %p715_p0 = scmp.ne.s32.totalorder %s909_s8, %s714_s13  ;;  %p716_p1 = pneg %p913_p13 }
  0x16   : > { %s719_s22 = scalar_lea.hbm %s1050_s0, 1024  ;;  %p720_p4 = scmp.lt.u32.totalorder %s909_s8, %s1050_s0 }
  0x17   : > { %p717_p2 = pnand %p716_p1, %p715_p0  ;;  %p721_p5 = scmp.lt.u32.totalorder %s719_s22, %s714_s13 }
  0x18   : > { %p723_p8 = scmp.lt.u32.totalorder %s714_s13, %s909_s8 }
  0x19   : > { %p718_p3 = pneg %p717_p2  ;;  %p722_p7 = por %p721_p5, %p720_p4 }
  0x1b   : > { %p724_p10 = por %p723_p8, %p722_p7 }
  0x1d   : > { %p725_p9 = pnand %p724_p10, %p718_p3 }
  0x1f   : > { %728 = shalt.err (!%p725_p9)
}
  0x20   : > { %s729_s29 = scalar_lea.vmem %s917_s10, 512  ;;  %s812_s30 = smov [#allocation2]  }
  0x21   : > { %p730_p0 = scmp.ne.s32.totalorder %s917_s10, %s729_s29  ;;  %s734_s5 = sshll.u32 %s812_s30, 4  ;;  %s735_s5 = int_to_ptr.vmem [resolvable:$false] %s734_s5 }
  0x22   : > { %s736_s6 = scalar_lea.vmem %s735_s5, 1024  ;;  %p737_p11 = scmp.lt.s32.totalorder %s917_s10, %s735_s5 }
  0x23   : > { %p732_p2 = pnand %p730_p0, %p716_p1  ;;  %p738_p4 = scmp.lt.s32.totalorder %s736_s6, %s729_s29 }
  0x25   : > { %p733_p12 = pneg %p732_p2  ;;  %p739_p5 = por %p738_p4, %p737_p11 }
  0x27   : > { %p740_p7 = pnand %p739_p5, %p733_p12 }
  0x29   : > { %743 = shalt.err (!%p740_p7)
}
  0x2a   : > { %s813_s7 = smov 256   ;;  %s814_s9 = smov 16  }
  0x2b   : > { %664 = dma.hbm_to_vmem [thread:$0]  (!%p913_p13), %s909_s8, 512, %s917_s10, %s919_s12, %s813_s7, %s813_s7, %s814_s9  }
  0x2c   : > { %p607_p9 = scmp.ge.s32.totalorder %s810_s18, 1  ;;  %p181_p1 = scmp.lt.s32.totalorder %s810_s18, 3 }
  0x2e   : > { %p182_p3 = pnand %p607_p9, %p181_p1 }
  0x2f   : > { %s950_s13 = sand.u32 (!%p182_p3), 1, %s802_s16  }
  0x30   : > { %185 = sbr.rel (%p182_p3) target bundleno = 803 (0x323), region = 36  ;;  %s608_s14 = sshll.u32 (!%p182_p3), %s950_s13, 5 }
  0x31   : > { %s188_s20 = scalar_lea.sflag (!%p182_p3), [#allocation3], %s950_s13  ;;  %s191_s22 = scalar_lea.vmem (!%p182_p3), [#allocation2], %s608_s14 }
  0x37   : > { %789 = dma.done.wait (%p889_p6), %s188_s20, 512  }
  0x38   : > { %791 = vsyncadd (%p889_p6), %s188_s20, 4294966784  ;;  %v960_v0 = vld [vmem:[%s191_s22] sm:$0xff]  ;;  %v962_v1 = vld [vmem:[%s191_s22 + $0x8] sm:$0xff]  ;;  %v815_v11 = vmov 0.0|0.0   ;;  %vm816_vm0 = vmmov 0   ;;  %v817_v12 = vmov 0.0   ;;  %v240_v13 = vlaneseq }
  0x39   : > { %v964_v2 = vld [vmem:[%s191_s22 + $0x10] sm:$0xff]  ;;  %v228_v3 = vmax.f32 %v960_v0, %v962_v1  ;;  %v220_v4 = vadd.f32 %v962_v1, %v960_v0  ;;  %v970_v5 = vld [vmem:[%s191_s22 + $0x18] sm:$0xff]  ;;  %v236_v8 = vld [vmem:[%s1052_s2] sm:$0xff]  ;;  %649 = vmatprep.subr.bf16.mxu0 %v815_v11  ;;  %634 = vmatprep.mubr.msk.f32.mxu0 %vm816_vm0, %v817_v12  ;;  %vm251_vm1 = vcmask 130112   ;;  %vm253_vm2 = vcmask 130048   ;;  %s215_s6 = scalar_lea.vmem [#allocation5], %s608_s14 }
  0x3a   : > { %v231_v6 = vmax.f32 %v964_v2, %v970_v5  ;;  %v223_v7 = vadd.f32 %v970_v5, %v964_v2  ;;  %v237_v9 = vld [vmem:[%s1052_s2 + $0x8] sm:$0xff]  ;;  %644 = vmatprep.subr.mxu1 %v817_v12  ;;  %646 = vmatprep.mubr.msk.f32.mxu1 %vm816_vm0, %v817_v12  ;;  %v241_v14 = vand.u32 127, %v240_v13  ;;  %v243_v15 = vshrl.u32 %v240_v13, 7  ;;  %v234_v21 = vld [vmem:[%s1051_s1] sm:$0xff]  ;;  %s528_s7 = sshll.u32 %s215_s6, 4  ;;  %s621_s9 = sshll.u32 %s867_s19, 9  ;;  %s997_s7 = int_to_ptr.vmem [resolvable:$true] %s528_s7 }
  0x3b   : > { %229 = vmax.xlane.f32.xlu0 %v228_v3  ;;  %221 = vadd.xlane.f32.xlu1 %v220_v4  ;;  %v650_v10 = vpack.c.bf16 %v237_v9, %v236_v8  ;;  %v235_v22 = vld [vmem:[%s1051_s1 + $0x8] sm:$0xff]  ;;  %v410_v34 = vld [vmem:[%s1053_s3] sm:$0x3]  ;;  %vm415_vm3 = vcmask 1041408   ;;  %vm411_vm4 = vcmask 15360   ;;  %s1002_s26 = scalar_lea.hbm %s1054_s4, %s621_s9  ;;  %s515_s19 = scalar_lea.sflag [#allocation4], %s950_s13 }
  0x3c   : > { %v246_v16 = vadd.s32 4294967288, %v241_v14  ;;  %v244_v19 = vsub.s32 %v241_v14, %v243_v15  ;;  %v653_v27 = vpack.c.bf16 %v235_v22, %v234_v21  ;;  %645 = vmatpush3.msk.msra.mxu1 %vm415_vm3, %v410_v34  ;;  %v497_v43 = vsub.s32 0, %v243_v15  ;;  %s744_s14 = scalar_lea.vmem %s997_s7, 512  ;;  %p1061_p11 = scmp.ne.s32.totalorder %s1058_s27, 0 }
  0x3d   : > { %651 = vmatpush3.bf16.msra.mxu0 %v650_v10  ;;  %p745_p6 = scmp.ne.s32.totalorder %s997_s7, %s744_s14  ;;  %s818_s8 = smov [#allocation5]  }
  0x3e   : > { %652 = vmatprep.subr.bf16.mxu0 %v815_v11  ;;  %v249_v20 = vsub.s32 %v246_v16, %v243_v15  ;;  %s748_s10 = sshll.u32 %s818_s8, 4  ;;  %s749_s10 = int_to_ptr.vmem [resolvable:$false] %s748_s10 }
  0x3f   : > { %232 = vmax.xlane.f32.xlu0 %v231_v6  ;;  %224 = vadd.xlane.f32.xlu1 %v223_v7  ;;  %p746_p12 = pnand %p745_p6, %p1061_p11  ;;  %s750_s11 = scalar_lea.vmem %s749_s10, 1024 }
  0x40   : > { %p751_p8 = scmp.lt.s32.totalorder %s997_s7, %s749_s10  ;;  %p752_p10 = scmp.lt.s32.totalorder %s750_s11, %s744_s14 }
  0x41   : > { %p747_p13 = pneg %p746_p12 }
  0x42   : > { %p753_p0 = por %p752_p10, %p751_p8 }
  0x44   : > { %p754_p2 = pnand %p753_p0, %p747_p13 }
  0xc8   : > { %v230_v17 = vpop.xlane.xlu0 %229  ;;  %v222_v18 = vpop.xlane.xlu1 %221 }
  0xc9   : > { %v245_v25 = vrot.slane %v230_v17, %v244_v19  ;;  %v226_v28 = vmul.f32 0.00390625, %v222_v18 }
  0xcb   : > { %v331_v31 = vrot.slane %v226_v28, %v244_v19 }
  0xcc   : > { %v233_v23 = vpop.xlane.xlu0 %232  ;;  %v225_v24 = vpop.xlane.xlu1 %224 }
  0xcd   : > { %v250_v26 = vrot.slane %v233_v23, %v249_v20  ;;  %v227_v29 = vmul.f32 0.00390625, %v225_v24 }
  0xcf   : > { %v252_v30 = vsel %vm251_vm1, %v250_v26, %v245_v25  ;;  %v335_v32 = vrot.slane %v227_v29, %v249_v20 }
  0xd0   : > { %635 = vmatmul.mubr.msk.f32.vlgmr.msra.gmra.mrb[0].mxu0 %vm253_vm2, %v252_v30 }
  0xd1   : > { %654 = vmatpush3.bf16.msra.mxu0 %v653_v27  ;;  %641 = vmatprep.mubr.msk.f32.mxu0 %vm816_vm0, %v817_v12  ;;  %v336_v33 = vsel %vm251_vm1, %v335_v32, %v331_v31 }
  0xd8   : > { %642 = vmatmul.mubr.msk.f32.vlgmr.msra.gmra.mrb[0].mxu0 %vm253_vm2, %v336_v33 }
 0x1ab   : > { %v405_v35 = vpop.f32.mrb[0].mxu0 }
 0x1ac   : > { %v409_v36 = vmax.f32 %v405_v35, 0.0  ;;  %v643_v37 = vpop.f32.mrb[1].mxu0 }
 0x1ae   : > { %647 = vmatmul.mubr.msk.f32.vlgmr.msra.gmra.mrb[0].mxu1 %vm411_vm4, %v409_v36 }
 0x281   : > { %v485_v38 = vpop.f32.mrb[0].mxu1 }
 0x282   : > { %v614_v39 = vmul.f32 -1.442695, %v485_v38  ;;  %v648_v40 = vpop.f32.mrb[1].mxu1 }
 0x284   : > { %710 = vpow2.f32 %v614_v39 }
 0x28e   : > { %v711_v41 = vpop.eup %710 }
 0x28f   : > { %v492_v42 = vadd.f32 1.0, %v711_v41 }
 0x291   : > { %712 = vrcp.f32 %v492_v42 }
 0x29b   : > { %v713_v44 = vpop.eup %712 }
 0x29c   : > { %v498_v45 = vrot.slane %v713_v44, %v497_v43 }
 0x29e   : > { %504 = vbcast.lane.b32.xlu1 %v498_v45, 264  ;;  %500 = vbcast.lane.b32.xlu0 %v498_v45, 256 }
 0x310   : > { %v505_v46 = vpop.permute.xlu1 %504  ;;  %v501_v47 = vpop.permute.xlu0 %500 }
 0x311   : > { %v508_v48 = vmul.f32 %v505_v46, %v964_v2  ;;  %v509_v49 = vmul.f32 %v505_v46, %v970_v5  ;;  %v506_v50 = vmul.f32 %v501_v47, %v960_v0  ;;  %v507_v51 = vmul.f32 %v501_v47, %v962_v1 }
 0x313   : > { %512 = vst [vmem:[%s215_s6 + $0x10] sm:$0xff] %v508_v48  ;;  %513 = vst [vmem:[%s215_s6 + $0x18] sm:$0xff] %v509_v49 }
 0x314   : > { %510 = vst [vmem:[%s215_s6] sm:$0xff] %v506_v50  ;;  %511 = vst [vmem:[%s215_s6 + $0x8] sm:$0xff] %v507_v51 }
 0x315   : > { %757 = shalt.err (!%p754_p2)
}
 0x316   : > { %s758_s12 = scalar_lea.hbm %s1002_s26, 512  ;;  %s762_s29 = scalar_lea.hbm %s1054_s4, 1024 }
 0x317   : > { %p759_p4 = scmp.ne.s32.totalorder %s1002_s26, %s758_s12  ;;  %p763_p9 = scmp.lt.u32.totalorder %s1002_s26, %s1054_s4 }
 0x318   : > { %p764_p1 = scmp.lt.u32.totalorder %s762_s29, %s758_s12  ;;  %p766_p6 = scmp.lt.u32.totalorder %s758_s12, %s1002_s26 }
 0x319   : > { %p760_p5 = pnand %p759_p4, %p1061_p11 }
 0x31a   : > { %p765_p3 = por %p764_p1, %p763_p9 }
 0x31b   : > { %p761_p7 = pneg %p760_p5 }
 0x31c   : > { %p767_p12 = por %p766_p6, %p765_p3 }
 0x31e   : > { %p768_p13 = pnand %p767_p12, %p761_p7 }
 0x320   : > { %771 = shalt.err (!%p768_p13)
}
 0x321   : > { %s819_s6 = smov 256   ;;  %s820_s9 = smov 16  }
 0x322   : > { %659 = dma.vmem_to_hbm [thread:$0]  (%p1061_p11), %s997_s7, 512, %s1002_s26, %s515_s19, %s819_s6, %s819_s6, %s820_s9  }
 0x323 PF: > { %s543_s20 = sand.u32 1, %s798_s15   ;;  %p1062_p8 = scmp.ne.s32.totalorder %s1059_s28, 0 }
 0x324   : > { %p1063_p10 = scmp.ge.s32.totalorder %s810_s18, 2  ;;  %s544_s22 = scalar_lea.sflag [#allocation4], %s543_s20 }
 0x326   : > { %p666_p0 = pnand %p1063_p10, %p1062_p8 }
 0x328   : > { %793 = dma.done.wait (!%p666_p0), %s544_s22, 512  }
 0x329   : > { %795 = vsyncadd (!%p666_p0), %s544_s22, 4294966784  ;;  %p17_p2 = scmp.ge.s32.totalorder %s871_s21, 4   ;;  %s1064_s15 = smov %s802_s16 }
 0x32a   : > { %s1065_s16 = smov %s806_s17  ;;  %s1066_s17 = smov %s883_s24 }
 0x32b   : > { %s1067_s18 = smov %s871_s21  ;;  %19 = sbr.rel (!%p17_p2) target bundleno = 5 (0x5), region = 81 }
 0x332   :  { %549 = vsyncpa [#allocation3], 1 }
 0x333   :  { %551 = vsyncpa [#allocation3 + $0x1], 1 }
 0x334   :  { %552 = vsyncpa [#allocation4], 1 }
 0x335   :  { %554 = vsyncpa [#allocation4 + $0x1], 1 }

</bundles_post_ra>
